<compile_context>
chip_gen: v5e
topology: v5e:2x2
jax: 0.10.0
libtpu: 0.0.40
codegen_flags: <defaults>
</compile_context>

<pallas_src>
import jax
import jax.numpy as jnp
from jax.experimental import pallas as pl
from jax.experimental.pallas import tpu as pltpu

INPUT_DIM = 20
HIDDEN_DIM = 5
OUTPUT_DIM = 10

SUBLANE = 8              # sublane granularity for the (rows, features) layout
MAX_BATCH_TILE = 32768   # rows per grid step; ~7.5 MiB f32 double-buffered
MIN_SPLIT = 8192         # above this, force >= 2 grid steps (v7x dual TensorCore)


def _round_up(n, m):
    return ((n + m - 1) // m) * m


def _choose_tile(batch):
    """Pick the batch tile (rows per grid step)."""
    b8 = _round_up(batch, SUBLANE)
    if b8 <= MIN_SPLIT:
        # Small batch: one tile; splitting only adds per-step overhead.
        return b8
    # Large batch: at least two tiles so both v7x TensorCores get work, capped
    # so the double-buffered working set stays well inside VMEM on all gens.
    return min(MAX_BATCH_TILE, _round_up(pl.cdiv(b8, 2), SUBLANE))


def mlp_kernel(x_ref, w1_ref, b1_ref, w2_ref, b2_ref, o_ref):
    # x:  [TB, INPUT_DIM]   (batch rows on sublanes, features on lanes)
    # w1: [INPUT_DIM, HIDDEN_DIM]   b1: [1, HIDDEN_DIM]
    # w2: [HIDDEN_DIM, OUTPUT_DIM]  b2: [1, OUTPUT_DIM]
    # o:  [TB, OUTPUT_DIM]
    h = jnp.dot(x_ref[...], w1_ref[...], preferred_element_type=jnp.float32)
    h = h + b1_ref[...]
    # Exact sigmoid: exp goes to the EUP; the divide's VPU cost is hidden under
    # the HBM DMA bottleneck.  (For very negative h, exp(-h)=inf -> result 0.)
    s = 1.0 / (1.0 + jnp.exp(-h))
    o = jnp.dot(s, w2_ref[...], preferred_element_type=jnp.float32)
    o_ref[...] = (o + b2_ref[...]).astype(o_ref.dtype)


def feedforward(x, w1, b1, w2, b2, *, tile=None):
    """Forward pass of the MLP.

    x : [B, INPUT_DIM] f32
    w1: [INPUT_DIM, HIDDEN_DIM], b1: [HIDDEN_DIM]
    w2: [HIDDEN_DIM, OUTPUT_DIM], b2: [OUTPUT_DIM]
    Returns [B, OUTPUT_DIM] f32.
    """
    B = x.shape[0]
    tb = tile if tile is not None else _choose_tile(B)
    num_tiles = pl.cdiv(B, tb)

    xf = x.astype(jnp.float32)                                   # [B, IN]
    w1f = w1.astype(jnp.float32)                                 # [IN, HID]
    w2f = w2.astype(jnp.float32)                                 # [HID, OUT]
    b1r = b1.reshape(1, HIDDEN_DIM).astype(jnp.float32)
    b2r = b2.reshape(1, OUTPUT_DIM).astype(jnp.float32)

    weight_bytes = 4 * (INPUT_DIM * HIDDEN_DIM + HIDDEN_DIM
                        + HIDDEN_DIM * OUTPUT_DIM + OUTPUT_DIM)
    cost = pl.CostEstimate(
        flops=2 * B * (INPUT_DIM * HIDDEN_DIM + HIDDEN_DIM * OUTPUT_DIM),
        transcendentals=B * HIDDEN_DIM,
        bytes_accessed=4 * B * (INPUT_DIM + OUTPUT_DIM) + weight_bytes,
    )

    out = pl.pallas_call(
        mlp_kernel,
        out_shape=jax.ShapeDtypeStruct((B, OUTPUT_DIM), jnp.float32),
        grid=(num_tiles,),
        in_specs=[
            pl.BlockSpec((tb, INPUT_DIM), lambda i: (i, 0)),          # x tile
            pl.BlockSpec((INPUT_DIM, HIDDEN_DIM), lambda i: (0, 0)),  # W1 (resident)
            pl.BlockSpec((1, HIDDEN_DIM), lambda i: (0, 0)),          # b1 (resident)
            pl.BlockSpec((HIDDEN_DIM, OUTPUT_DIM), lambda i: (0, 0)),  # W2 (resident)
            pl.BlockSpec((1, OUTPUT_DIM), lambda i: (0, 0)),           # b2 (resident)
        ],
        out_specs=pl.BlockSpec((tb, OUTPUT_DIM), lambda i: (i, 0)),
        compiler_params=pltpu.CompilerParams(
            dimension_semantics=("parallel",),
            vmem_limit_bytes=32 * 1024 * 1024,   # >> ~7.5 MiB worst-case working set
        ),
        cost_estimate=cost,
    )(xf, w1f, b1r, w2f, b2r)

    return out


def init_params(key):
    """Deterministic init matching nn.Linear (math layout: y = x @ W + b)."""
    k1, k2, k3, k4 = jax.random.split(key, 4)
    bound1 = 1.0 / (INPUT_DIM ** 0.5)
    bound2 = 1.0 / (HIDDEN_DIM ** 0.5)
    w1 = jax.random.uniform(k1, (INPUT_DIM, HIDDEN_DIM), jnp.float32, -bound1, bound1)
    b1 = jax.random.uniform(k2, (HIDDEN_DIM,), jnp.float32, -bound1, bound1)
    w2 = jax.random.uniform(k3, (HIDDEN_DIM, OUTPUT_DIM), jnp.float32, -bound2, bound2)
    b2 = jax.random.uniform(k4, (OUTPUT_DIM,), jnp.float32, -bound2, bound2)
    return w1, b1, w2, b2


def reference(x, w1, b1, w2, b2):
    hp = jax.lax.Precision.HIGHEST
    h = jax.nn.sigmoid(jnp.dot(x, w1, precision=hp) + b1)
    return jnp.dot(h, w2, precision=hp) + b2


if __name__ == "__main__":
    key = jax.random.PRNGKey(0)
    kx, kp = jax.random.split(key)
    w1, b1, w2, b2 = init_params(kp)

    ok = True
    # (batch, forced tile): default single-tile path, ragged single-tile path,
    # and a forced multi-tile path with a ragged last block.
    for batch, tile in ((8, None), (300, None), (300, 128)):
        x = jax.random.normal(jax.random.fold_in(kx, batch),
                              (batch, INPUT_DIM), jnp.float32)
        out = feedforward(x, w1, b1, w2, b2, tile=tile)
        out = jax.block_until_ready(out)
        ref = reference(x, w1, b1, w2, b2)
        assert out.shape == (batch, OUTPUT_DIM)
        ok &= bool(jnp.allclose(out, ref, atol=1e-4, rtol=1e-4))

    assert ok
    print("KERNEL_OK")
</pallas_src>

<mosaic_0001>
module attributes {stable_mosaic.version = 11 : i64} {
  func.func @mlp_kernel(%arg0: i32, %arg1: memref<8x20xf32, #tpu.memory_space<vmem>>, %arg2: memref<20x5xf32, #tpu.memory_space<vmem>>, %arg3: memref<1x5xf32, #tpu.memory_space<vmem>>, %arg4: memref<5x10xf32, #tpu.memory_space<vmem>>, %arg5: memref<1x10xf32, #tpu.memory_space<vmem>>, %arg6: memref<8x10xf32, #tpu.memory_space<vmem>>) attributes {dimension_semantics = [#tpu.dimension_semantics<parallel>], iteration_bounds = array<i64: 1>, scalar_prefetch = 0 : i64, scratch_operands = 0 : i64, tpu.core_type = #tpu.core_type<tc>, window_params = [{transform_indices = @transform_0, window_bounds = array<i64: 8, 20>}, {pipeline_mode = #tpu.pipeline_mode<synchronous>, transform_indices = @transform_1, window_bounds = array<i64: 20, 5>}, {pipeline_mode = #tpu.pipeline_mode<synchronous>, transform_indices = @transform_2, window_bounds = array<i64: 1, 5>}, {pipeline_mode = #tpu.pipeline_mode<synchronous>, transform_indices = @transform_3, window_bounds = array<i64: 5, 10>}, {pipeline_mode = #tpu.pipeline_mode<synchronous>, transform_indices = @transform_4, window_bounds = array<i64: 1, 10>}, {transform_indices = @transform_5, window_bounds = array<i64: 8, 10>}]} {
    %c0 = arith.constant 0 : index
    %c0_0 = arith.constant 0 : index
    %0 = vector.load %arg1[%c0, %c0_0] : memref<8x20xf32, #tpu.memory_space<vmem>>, vector<8x20xf32>
    %c0_1 = arith.constant 0 : index
    %c0_2 = arith.constant 0 : index
    %1 = vector.load %arg2[%c0_1, %c0_2] : memref<20x5xf32, #tpu.memory_space<vmem>>, vector<20x5xf32>
    %cst = arith.constant dense<0.000000e+00> : vector<8x5xf32>
    %2 = tpu.matmul %0, %1, %cst {dimension_numbers = #tpu.dot_dimension_numbers<[1], [0], [0], [1], [0, 0, 1, 1], [], []>} : vector<8x20xf32>, vector<20x5xf32>, vector<8x5xf32> -> vector<8x5xf32>
    %c0_3 = arith.constant 0 : index
    %c0_4 = arith.constant 0 : index
    %3 = vector.load %arg3[%c0_3, %c0_4] : memref<1x5xf32, #tpu.memory_space<vmem>>, vector<1x5xf32>
    %4 = vector.broadcast %3 : vector<1x5xf32> to vector<8x5xf32>
    %5 = arith.addf %2, %4 : vector<8x5xf32>
    %cst_5 = arith.constant 0.000000e+00 : f32
    %6 = vector.broadcast %cst_5 : f32 to vector<8x5xf32>
    %7 = arith.subf %6, %5 : vector<8x5xf32>
    %8 = math.exp %7 : vector<8x5xf32>
    %cst_6 = arith.constant 1.000000e+00 : f32
    %9 = vector.broadcast %cst_6 : f32 to vector<8x5xf32>
    %10 = arith.addf %9, %8 : vector<8x5xf32>
    %cst_7 = arith.constant 1.000000e+00 : f32
    %11 = vector.broadcast %cst_7 : f32 to vector<8x5xf32>
    %12 = arith.divf %11, %10 : vector<8x5xf32>
    %c0_8 = arith.constant 0 : index
    %c0_9 = arith.constant 0 : index
    %13 = vector.load %arg4[%c0_8, %c0_9] : memref<5x10xf32, #tpu.memory_space<vmem>>, vector<5x10xf32>
    %cst_10 = arith.constant dense<0.000000e+00> : vector<8x10xf32>
    %14 = tpu.matmul %12, %13, %cst_10 {dimension_numbers = #tpu.dot_dimension_numbers<[1], [0], [0], [1], [0, 0, 1, 1], [], []>} : vector<8x5xf32>, vector<5x10xf32>, vector<8x10xf32> -> vector<8x10xf32>
    %c0_11 = arith.constant 0 : index
    %c0_12 = arith.constant 0 : index
    %15 = vector.load %arg5[%c0_11, %c0_12] : memref<1x10xf32, #tpu.memory_space<vmem>>, vector<1x10xf32>
    %16 = vector.broadcast %15 : vector<1x10xf32> to vector<8x10xf32>
    %17 = arith.addf %14, %16 : vector<8x10xf32>
    %c0_13 = arith.constant 0 : index
    %c0_14 = arith.constant 0 : index
    %18 = vector.load %arg6[%c0_13, %c0_14] : memref<8x10xf32, #tpu.memory_space<vmem>>, vector<8x10xf32>
    tpu.vector_store %arg6[%c0_13, %c0_14], %17 {strides = array<i32>} : memref<8x10xf32, #tpu.memory_space<vmem>>, vector<8x10xf32>,
    return
  }
  func.func @transform_0(%arg0: i32) -> (i32, i32) {
    %c0_i32 = arith.constant 0 : i32
    %c0_i32_0 = arith.constant 0 : i32
    return %arg0, %c0_i32 : i32, i32
  }
  func.func @transform_1(%arg0: i32) -> (i32, i32) {
    %c0_i32 = arith.constant 0 : i32
    %c0_i32_0 = arith.constant 0 : i32
    %c0_i32_1 = arith.constant 0 : i32
    return %c0_i32, %c0_i32_0 : i32, i32
  }
  func.func @transform_2(%arg0: i32) -> (i32, i32) {
    %c0_i32 = arith.constant 0 : i32
    %c0_i32_0 = arith.constant 0 : i32
    %c0_i32_1 = arith.constant 0 : i32
    return %c0_i32, %c0_i32_0 : i32, i32
  }
  func.func @transform_3(%arg0: i32) -> (i32, i32) {
    %c0_i32 = arith.constant 0 : i32
    %c0_i32_0 = arith.constant 0 : i32
    %c0_i32_1 = arith.constant 0 : i32
    return %c0_i32, %c0_i32_0 : i32, i32
  }
  func.func @transform_4(%arg0: i32) -> (i32, i32) {
    %c0_i32 = arith.constant 0 : i32
    %c0_i32_0 = arith.constant 0 : i32
    %c0_i32_1 = arith.constant 0 : i32
    return %c0_i32, %c0_i32_0 : i32, i32
  }
  func.func @transform_5(%arg0: i32) -> (i32, i32) {
    %c0_i32 = arith.constant 0 : i32
    %c0_i32_0 = arith.constant 0 : i32
    return %arg0, %c0_i32 : i32, i32
  }
}

</mosaic_0001>

<bundles_post_ra>
// kernel: tpu_custom_call.1
= control target key start
LH: loop header
LB: loop body
LE: loop exit
PB: predicated region body
PF: predicated region fallthrough
CT: control target
= control target key end

     0   :  { %vm33_vm0 = vcmask 1043456   ;;  %s219_s0 = inlined_call_operand.vmem [shape: f32[8,20], index: 0, kind: input, shape index: {}]   ;;  %s220_s1 = inlined_call_operand.vmem [shape: f32[20,5], index: 1, kind: input, shape index: {}]   ;;  %s221_s2 = inlined_call_operand.vmem [shape: f32[1,5], index: 2, kind: input, shape index: {}]   ;;  %s222_s3 = inlined_call_operand.vmem [shape: f32[5,10], index: 3, kind: input, shape index: {}]   ;;  %s223_s4 = inlined_call_operand.vmem [shape: f32[1,10], index: 4, kind: input, shape index: {}]   ;;  %s224_s5 = inlined_call_operand.hbm [shape: f32[8,10], index: 5, kind: output, shape index: {}]  }
   0x1   :  { %v24_v0 = vld [vmem:[%s220_s1 + $0x10] sm:$0xf]  ;;  %v23_v1 = vld [vmem:[%s220_s1 + $0x8] sm:$0xff]  ;;  %v22_v2 = vld [vmem:[%s220_s1] sm:$0xff] }
   0x2   :  { %127 = vmatpush.msk.msra.mxu0 %vm33_vm0, %v24_v0 }
   0x3   :  { %10 = vsyncpa [#allocation3], 0  ;;  %v21_v3 = vld [vmem:[%s219_s0] sm:$0xff]  ;;  %vm29_vm1 = vcmask 162816   ;;  %vm85_vm2 = vcmask 1044480   ;;  %vm81_vm6 = vcmask 39936  }
   0x4   :  { %51 = vmatpush.msra.mxu0 %v23_v1  ;;  %v76_v4 = vld [vmem:[%s222_s3] sm:$0x1f]  ;;  %s118_s7 = sshll.u32 %s224_s5, 4  ;;  %vm109_vm8 = vcmask 80896   ;;  %s119_s7 = int_to_ptr.hbm [resolvable:$true] %s118_s7 }
   0x5   :  { %129 = vmatpush.msk.msra.mxu1 %vm85_vm2, %v76_v4  ;;  %v132_v5 = vld [vmem:[%s221_s2] ss:$0 sm:$0xff]  ;;  %s164_s2 = smov [#allocation2]  }
   0x6   :  { %52 = vmatpush.msra.mxu0 %v22_v2  ;;  %v133_v22 = vld [vmem:[%s223_s4] ss:$0 sm:$0xff]  ;;  %s116_s3 = sshll.u32 %s164_s2, 4  ;;  %s117_s3 = int_to_ptr.vmem [resolvable:$true] %s116_s3 }
   0x7   :  { %128 = vmatmul.msk.f32.vlgmr.msra.gmra.mxu0 %vm29_vm1, %v21_v3 }
  0x84   :  { %v54_v6 = vpop.f32.mrf.mxu0 }
  0x85   :  { %v55_v7 = vadd.f32 %v132_v5, %v54_v6 }
  0x87   :  { %v57_v8 = vsub.f32 0.0, %v55_v7 }
  0x89   :  { %v58_v9 = vmul.f32 1.442695, %v57_v8 }
  0x8b   :  { %134 = vpow2.f32 %v58_v9 }
  0x91   :  { %v135_v10 = vpop.eup %134 }
  0x92   :  { %v60_v11 = vadd.f32 1.0, %v135_v10 }
  0x94   :  { %136 = vrcp.f32 %v60_v11  ;;  %v72_v15 = vand.u32 2147483648, %v60_v11  ;;  %v70_v17 = vand.u32 2147483647, %v60_v11  ;;  %vm66_vm4 = vweird.f32 %v60_v11 }
  0x96   :  { %v73_v19 = vor.u32 1.1754944e-38, %v72_v15  ;;  %vm71_vm7 = vcmp.eq.f32.partialorder %v70_v17, 8.507059e+37 }
  0x9a   :  { %v137_v12 = vpop.eup %136 }
  0x9b   :  { %v62_v13 = vmul.f32 %v137_v12, %v60_v11  ;;  %vm67_vm3 = vweird.f32 %v137_v12 }
  0x9c   :  { %vm68_vm5 = vmor %vm66_vm4, %vm67_vm3 }
  0x9d   :  { %v63_v14 = vsub.f32 1.0, %v62_v13 }
  0x9f   :  { %v64_v16 = vmul.f32 %v137_v12, %v63_v14 }
  0xa1   :  { %v65_v18 = vadd.f32 %v137_v12, %v64_v16 }
  0xa3   :  { %v69_v20 = vsel %vm68_vm5, %v137_v12, %v65_v18 }
  0xa4   :  { %v74_v21 = vsel %vm71_vm7, %v73_v19, %v69_v20 }
  0xa5   :  { %130 = vmatmul.msk.f32.vlgmr.msra.gmra.mxu1 %vm81_vm6, %v74_v21 }
 0x122   :  { %v106_v23 = vpop.f32.mrf.mxu1 }
 0x123   :  { %v107_v24 = vadd.f32 %v133_v22, %v106_v23 }
 0x125   :  { %110 = vst.msk [vmem:[#allocation2] sm:$0xff] %vm109_vm8, %v107_v24 }
 0x126   :  { %121 = dma.vmem_to_hbm [thread:$0]  %s117_s3, 128, %s119_s7, [#allocation3]  }
 0x127   :  { %162 = dma.done.wait [#allocation3], 128  }
 0x128   :  { %163 = vsyncadd [#allocation3], 4294967168 }
 0x129   :  { %126 = vsyncpa [#allocation3], 1 }

</bundles_post_ra>
